<compile_context>
chip_gen: v6e
topology: v6e:2x2x1
jax: 0.10.0
libtpu: 0.0.40
codegen_flags: <defaults>
</compile_context>

<pallas_src>
import functools

import jax
import jax.numpy as jnp
from jax import lax
from jax.experimental import pallas as pl
from jax.experimental.pallas import tpu as pltpu


def _logdet_post_kernel(x_ref, o_ref, *, step_size, reg_sp, num_iters,
                        threshold):
    """Elementwise post-processing on one lane-dense (tile_rows, 128) block."""
    x0 = x_ref[...].astype(jnp.float32)

    thr = jnp.float32(threshold)
    scores = jnp.where(x0 > thr, x0, 0.0)            # nn.Threshold(thr, 0)
    ss = jnp.float32(step_size)
    shrink = jnp.float32(reg_sp * step_size)
    adv = ss * scores                                 # loop-invariant, >= 0

    if num_iters <= 0:
        x = x0
    else:
        # Iteration 1 explicitly: abs handles arbitrary-sign inputs; result in [0,1].
        x1 = jnp.minimum(jnp.maximum(jnp.abs(x0 + adv) - shrink, 0.0), 1.0)
        # Exact closed form for the remaining (num_iters - 1) iterations:
        # for x in [0,1] and adv >= 0 one step is clamp(x + (adv - shrink), 0, 1),
        # and its k-fold iterate is clamp(x + k*(adv - shrink), 0, 1).
        d = adv - shrink
        x = jnp.clip(x1 + jnp.float32(num_iters - 1) * d, 0.0, 1.0)

    x = jnp.where(x > thr, x, 0.0)                    # final threshold
    o_ref[...] = x.astype(o_ref.dtype)


def logdet_post_processing_block(adj, *, step_pri=0.01, reg_sp=0.002,
                                 num_iters=1000, threshold=0.5):
    """JAX/Pallas equivalent of LogDetPostProcessingBlock.forward.

    adj: either (B, N, N) (the natural shape for constraint_logdet) or
         (1, C, N, N) (what `x, scores = adj.repeat(2,1,1,1)` unpacking
         requires in the 4-D case).  The op is purely elementwise on x.
    Returns: array with the leading singleton dim (if any) stripped, same
    dtype as adj.
    """
    if adj.ndim == 4:
        assert adj.shape[0] == 1, "4-D adj must have leading dim 1"
        x0 = adj[0]
    elif adj.ndim == 3:
        x0 = adj
    else:
        raise ValueError("adj must be (B, N, N) or (1, C, N, N)")

    out_shape = x0.shape
    total = int(x0.size)

    # Lane-dense layout: flatten, pad to full (tile_rows, 128) blocks.
    LANES = 128
    rows = pl.cdiv(total, LANES)
    rows = ((rows + 7) // 8) * 8                      # (8, 128) tiling rule
    tile_rows = min(rows, 512)                        # 512*128*4B = 256 KiB/block
    rows_padded = ((rows + tile_rows - 1) // tile_rows) * tile_rows
    padded_total = rows_padded * LANES

    flat = x0.reshape(-1)
    if padded_total > total:
        flat = jnp.pad(flat, (0, padded_total - total))
    x2d = flat.reshape(rows_padded, LANES)

    kernel = functools.partial(_logdet_post_kernel, step_size=step_pri,
                               reg_sp=reg_sp, num_iters=num_iters,
                               threshold=threshold)

    out2d = pl.pallas_call(
        kernel,
        out_shape=jax.ShapeDtypeStruct((rows_padded, LANES), x0.dtype),
        grid_spec=pl.GridSpec(
            grid=(rows_padded // tile_rows,),
            in_specs=[pl.BlockSpec((tile_rows, LANES), lambda i: (i, 0))],
            out_specs=pl.BlockSpec((tile_rows, LANES), lambda i: (i, 0)),
        ),
        compiler_params=pltpu.CompilerParams(
            dimension_semantics=("parallel",)),       # megacore sharding
    )(x2d)

    return out2d.reshape(-1)[:total].reshape(out_shape)


def _reference(adj, step_pri=0.01, reg_sp=0.002, num_iters=1000,
               threshold=0.5):
    """Pure-JAX reference mirroring the PyTorch loop 1:1 (explicit iteration).

    The alpha / constraint_logdet dual update is omitted because it never
    feeds back into x or the returned value.
    """
    x = (adj[0] if adj.ndim == 4 else adj).astype(jnp.float32)
    scores = jnp.where(x > threshold, x, 0.0)

    def body(_, x):
        grad = -scores
        til_x = x - step_pri * grad
        new_x = jnp.maximum(jnp.abs(til_x) - reg_sp * step_pri, 0.0)
        return 1.0 - jnp.maximum(1.0 - new_x, 0.0)

    x = lax.fori_loop(0, num_iters, body, x)
    x = jnp.where(x > threshold, x, 0.0)
    return x.astype(adj.dtype)


if __name__ == "__main__":
    # Default-constructed module: step_pri/step_dual/reg_sp are plain Python
    # floats (no learnable parameters), so there are no weights to initialize.
    # adj must have square trailing dims (adjacency matrices).
    key = jax.random.PRNGKey(0)
    adj = jax.random.uniform(key, (1, 4, 16, 16), dtype=jnp.float32)

    out = logdet_post_processing_block(adj, step_pri=0.01, reg_sp=0.002,
                                       num_iters=1000, threshold=0.5)
    out = jax.block_until_ready(out)

    ref = jax.block_until_ready(_reference(adj))
    assert out.shape == (4, 16, 16)
    assert jnp.allclose(out, ref, atol=1e-5, rtol=1e-5)

    # TODO(synk): the alpha += step_dual * constraint_logdet(x) dual update
    # (torch.linalg.slogdet) is intentionally not implemented — it is dead
    # code with respect to the module's returned tensor.
    print("KERNEL_OK")
</pallas_src>

<mosaic_0001>
module attributes {stable_mosaic.version = 11 : i64} {
  func.func @_logdet_post_kernel(%arg0: i32, %arg1: memref<8x128xf32, #tpu.memory_space<vmem>>, %arg2: memref<8x128xf32, #tpu.memory_space<vmem>>) attributes {dimension_semantics = [#tpu.dimension_semantics<parallel>], iteration_bounds = array<i64: 1>, scalar_prefetch = 0 : i64, scratch_operands = 0 : i64, tpu.core_type = #tpu.core_type<tc>, window_params = [{transform_indices = @transform_0, window_bounds = array<i64: 8, 128>}, {transform_indices = @transform_1, window_bounds = array<i64: 8, 128>}]} {
    %c0 = arith.constant 0 : index
    %c0_0 = arith.constant 0 : index
    %0 = vector.load %arg1[%c0, %c0_0] : memref<8x128xf32, #tpu.memory_space<vmem>>, vector<8x128xf32>
    %cst = arith.constant 5.000000e-01 : f32
    %1 = vector.broadcast %cst : f32 to vector<8x128xf32>
    %2 = arith.cmpf ogt, %0, %1 : vector<8x128xf32>
    %cst_1 = arith.constant 0.000000e+00 : f32
    %3 = vector.broadcast %cst_1 : f32 to vector<8x128xf32>
    %4 = arith.select %2, %0, %3 : vector<8x128xi1>, vector<8x128xf32>
    %cst_2 = arith.constant 0.00999999977 : f32
    %5 = vector.broadcast %cst_2 : f32 to vector<8x128xf32>
    %6 = arith.mulf %5, %4 : vector<8x128xf32>
    %7 = arith.addf %0, %6 : vector<8x128xf32>
    %8 = math.absf %7 : vector<8x128xf32>
    %cst_3 = arith.constant 2.000000e-05 : f32
    %9 = vector.broadcast %cst_3 : f32 to vector<8x128xf32>
    %10 = arith.subf %8, %9 : vector<8x128xf32>
    %cst_4 = arith.constant 0.000000e+00 : f32
    %11 = vector.broadcast %cst_4 : f32 to vector<8x128xf32>
    %12 = arith.maximumf %10, %11 : vector<8x128xf32>
    %cst_5 = arith.constant 1.000000e+00 : f32
    %13 = vector.broadcast %cst_5 : f32 to vector<8x128xf32>
    %14 = arith.minimumf %12, %13 : vector<8x128xf32>
    %cst_6 = arith.constant 2.000000e-05 : f32
    %15 = vector.broadcast %cst_6 : f32 to vector<8x128xf32>
    %16 = arith.subf %6, %15 : vector<8x128xf32>
    %cst_7 = arith.constant 9.990000e+02 : f32
    %17 = vector.broadcast %cst_7 : f32 to vector<8x128xf32>
    %18 = arith.mulf %17, %16 : vector<8x128xf32>
    %19 = arith.addf %14, %18 : vector<8x128xf32>
    %cst_8 = arith.constant 0.000000e+00 : f32
    %cst_9 = arith.constant 1.000000e+00 : f32
    %20 = vector.broadcast %cst_8 : f32 to vector<8x128xf32>
    %21 = arith.maximumf %20, %19 : vector<8x128xf32>
    %22 = vector.broadcast %cst_9 : f32 to vector<8x128xf32>
    %23 = arith.minimumf %22, %21 : vector<8x128xf32>
    %cst_10 = arith.constant 5.000000e-01 : f32
    %24 = vector.broadcast %cst_10 : f32 to vector<8x128xf32>
    %25 = arith.cmpf ogt, %23, %24 : vector<8x128xf32>
    %cst_11 = arith.constant 0.000000e+00 : f32
    %26 = vector.broadcast %cst_11 : f32 to vector<8x128xf32>
    %27 = arith.select %25, %23, %26 : vector<8x128xi1>, vector<8x128xf32>
    %c0_12 = arith.constant 0 : index
    %c0_13 = arith.constant 0 : index
    %28 = vector.load %arg2[%c0_12, %c0_13] : memref<8x128xf32, #tpu.memory_space<vmem>>, vector<8x128xf32>
    tpu.vector_store %arg2[%c0_12, %c0_13], %27 {strides = array<i32>} : memref<8x128xf32, #tpu.memory_space<vmem>>, vector<8x128xf32>,
    return
  }
  func.func @transform_0(%arg0: i32) -> (i32, i32) {
    %c0_i32 = arith.constant 0 : i32
    %c0_i32_0 = arith.constant 0 : i32
    return %arg0, %c0_i32 : i32, i32
  }
  func.func @transform_1(%arg0: i32) -> (i32, i32) {
    %c0_i32 = arith.constant 0 : i32
    %c0_i32_0 = arith.constant 0 : i32
    return %arg0, %c0_i32 : i32, i32
  }
}

</mosaic_0001>

<bundles_post_ra>
// kernel: tpu_custom_call.1
= control target key start
LH: loop header
LB: loop body
LE: loop exit
PB: predicated region body
PF: predicated region fallthrough
CT: control target
= control target key end

     0   :  { %6 = vsyncpa [#allocation3], 0  ;;  %s119_s0 = inlined_call_operand.hbm [shape: f32[8,128], index: 0, kind: input, shape index: {}]   ;;  %s120_s1 = inlined_call_operand.hbm [shape: f32[8,128], index: 1, kind: output, shape index: {}]  }
   0x1   :  { %7 = vsyncpa [#allocation4], 0  ;;  %s101_s6 = smov [#allocation2]  }
   0x2   :  { %s14_s7 = sshll.u32 %s101_s6, 4  ;;  %s15_s7 = int_to_ptr.vmem [resolvable:$true] %s14_s7 }
   0x3   :  { %s65_s8 = scalar_lea.vmem %s15_s7, 128  ;;  %p70_p1 = scmp.lt.s32.totalorder %s15_s7, %s15_s7 }
   0x4   :  { %p66_p0 = scmp.ne.s32.totalorder %s15_s7, %s65_s8  ;;  %p71_p2 = scmp.lt.s32.totalorder %s65_s8, %s65_s8 }
   0x6   :  { %p72_p3 = por %p71_p2, %p70_p1 }
   0x8   :  { %p73_p4 = pnand %p72_p3, %p66_p0 }
   0xa   :  { %76 = shalt.err (!%p73_p4)
}
   0xb   :  { %17 = dma.hbm_to_vmem [thread:$0]  %s119_s0, 128, %s15_s7, [#allocation3]  }
   0xc   :  { %97 = dma.done.wait [#allocation3], 128  }
   0xd   :  { %98 = vsyncadd [#allocation3], 4294967168  ;;  %v21_v0 = vld [vmem:[#allocation2] sm:$0xff]  ;;  %s102_s11 = smov [#allocation5]  }
   0xe   :  { %vm22_vm0 = vcmp.gt.f32.partialorder %v21_v0, 0.5  ;;  %s44_s12 = sshll.u32 %s102_s11, 4  ;;  %s45_s12 = int_to_ptr.vmem [resolvable:$true] %s44_s12 }
   0xf   :  { %v23_v1 = vsel %vm22_vm0, %v21_v0, 0.0  ;;  %s77_s0 = scalar_lea.vmem %s45_s12, 128  ;;  %p82_p6 = scmp.lt.s32.totalorder %s45_s12, %s45_s12 }
  0x10   :  { %v24_v2 = vmul.f32 0.01, %v23_v1  ;;  %p78_p5 = scmp.ne.s32.totalorder %s45_s12, %s77_s0  ;;  %p83_p7 = scmp.lt.s32.totalorder %s77_s0, %s77_s0 }
  0x12   :  { %v25_v3 = vadd.f32 %v24_v2, %v21_v0  ;;  %v54_v5 = vadd.f32 -2e-05, %v24_v2  ;;  %p84_p8 = por %p83_p7, %p82_p6 }
  0x14   :  { %v26_v4 = vand.u32 2147483647, %v25_v3  ;;  %v31_v8 = vmul.f32 999.0, %v54_v5  ;;  %p85_p9 = pnand %p84_p8, %p78_p5 }
  0x16   :  { %v53_v6 = vadd.f32 -2e-05, %v26_v4 }
  0x18   :  { %v28_v7 = vmax.f32 %v53_v6, 0.0 }
  0x1a   :  { %v29_v9 = vmin.f32 %v28_v7, 1.0 }
  0x1c   :  { %v32_v10 = vadd.f32 %v31_v8, %v29_v9 }
  0x1e   :  { %v33_v11 = vmax.f32 %v32_v10, 0.0 }
  0x20   :  { %v34_v12 = vmin.f32 %v33_v11, 1.0 }
  0x22   :  { %vm35_vm1 = vcmp.gt.f32.partialorder %v34_v12, 0.5 }
  0x23   :  { %v36_v13 = vsel %vm35_vm1, %v34_v12, 0.0 }
  0x24   :  { %37 = vst [vmem:[#allocation5] sm:$0xff] %v36_v13 }
  0x25   :  { %88 = shalt.err (!%p85_p9)
}
  0x26   :  { %47 = dma.vmem_to_hbm [thread:$0]  %s45_s12, 128, %s120_s1, [#allocation4]  }
  0x27   :  { %99 = dma.done.wait [#allocation4], 128  }
  0x28   :  { %100 = vsyncadd [#allocation4], 4294967168 }
  0x29   :  { %51 = vsyncpa [#allocation3], 1 }
  0x2a   :  { %52 = vsyncpa [#allocation4], 1 }

</bundles_post_ra>
